<compile_context>
chip_gen: v5e
topology: v5e:2x2
jax: 0.10.0
libtpu: 0.0.40
codegen_flags: <defaults>
</compile_context>

<pallas_src>
import functools

import jax
import jax.numpy as jnp
from jax import lax
from jax.experimental import pallas as pl
from jax.experimental.pallas import tpu as pltpu


def _ffn_kernel(x_ref, w1_ref, b1_ref, w2_ref, b2_ref, o_ref):
    # Linear 1 — operands in model dtype, f32 accumulation on the MXU.
    h = jnp.dot(x_ref[...], w1_ref[...], preferred_element_type=jnp.float32)
    h = h + b1_ref[...].astype(jnp.float32)

    # Exact (erf-based) GELU in f32, matching torch.nn.GELU() default.
    h = 0.5 * h * (1.0 + lax.erf(h * jnp.float32(0.7071067811865476)))

    # TODO(synk): Dropout(p>0) would need pltpu.prng_random_bits masking;
    # reference config uses p=0.0 (identity).

    # Linear 2 — cast activation back to the weight dtype so bf16 weights hit
    # the bf16 MXU path (no-op for f32 weights), accumulate in f32.
    h = h.astype(w2_ref.dtype)
    o = jnp.dot(h, w2_ref[...], preferred_element_type=jnp.float32)
    o = o + b2_ref[...].astype(jnp.float32)

    o_ref[...] = o.astype(o_ref.dtype)


def _round_up(x, m):
    return ((x + m - 1) // m) * m


def _ffn_2d(x2d, w1, b1, w2, b2, *, tm):
    """x2d: (N, dim) real array -> (N, dim)."""
    n, dim = x2d.shape
    hidden = w1.shape[1]

    # Effective row tile: multiple of 8, no bigger than the (padded) row count.
    tm_eff = min(tm, _round_up(n, 8))
    # Prefer >= 2 grid steps so the "parallel" axis can be sharded across
    # TensorCores (2 TCs on v7x / megacore); per-step overhead is ~0.35 us.
    if n > 8 and _round_up(n, tm_eff) // tm_eff < 2:
        tm_eff = max(8, _round_up((n + 1) // 2, 8))
    n_pad = _round_up(n, tm_eff)
    xp = jnp.pad(x2d, ((0, n_pad - n), (0, 0))) if n_pad != n else x2d
    grid = (n_pad // tm_eff,)

    isz = jnp.dtype(x2d.dtype).itemsize

    cost = pl.CostEstimate(
        flops=4 * n_pad * dim * hidden,
        transcendentals=n_pad * hidden,
        bytes_accessed=(2 * n_pad * dim + 2 * dim * hidden + hidden + dim) * isz,
    )

    def build_call(single_buffer_weights):
        if single_buffer_weights:
            def w_spec(shape):
                return pl.BlockSpec(shape, lambda i: (0,) * len(shape),
                                    pipeline_mode=pl.Buffered(1))
            wbuf = 1
        else:
            def w_spec(shape):
                return pl.BlockSpec(shape, lambda i: (0,) * len(shape))
            wbuf = 2

        # Explicit VMEM budget: weights (+biases), double-buffered x/out tiles,
        # f32 intermediates, with 2x margin; clamped to [32 MiB, 64 MiB]
        # (64 MiB stays inside v7x's physical VMEM).
        weight_bytes = (dim * hidden + hidden * dim + hidden + dim) * isz * wbuf
        io_bytes = 2 * (2 * tm_eff * dim * isz)
        work_bytes = tm_eff * hidden * 4 + tm_eff * dim * 4
        est = weight_bytes + io_bytes + work_bytes
        vmem_limit = int(min(max(2 * est, 32 * 1024 * 1024), 64 * 1024 * 1024))

        return pl.pallas_call(
            _ffn_kernel,
            out_shape=jax.ShapeDtypeStruct((n_pad, dim), x2d.dtype),
            grid_spec=pltpu.PrefetchScalarGridSpec(
                num_scalar_prefetch=0,
                grid=grid,
                in_specs=[
                    pl.BlockSpec((tm_eff, dim), lambda i: (i, 0)),  # x tile
                    w_spec((dim, hidden)),                          # W1 (resident)
                    w_spec((1, hidden)),                            # b1
                    w_spec((hidden, dim)),                          # W2 (resident)
                    w_spec((1, dim)),                               # b2
                ],
                out_specs=pl.BlockSpec((tm_eff, dim), lambda i: (i, 0)),
            ),
            compiler_params=pltpu.CompilerParams(
                dimension_semantics=("parallel",),
                vmem_limit_bytes=vmem_limit),
            cost_estimate=cost,
        )

    try:
        y = build_call(True)(xp, w1, b1, w2, b2)
    except Exception:
        # Fallback if Buffered(1) single-buffering is unsupported on this
        # jax version / configuration: use default double-buffered specs.
        y = build_call(False)(xp, w1, b1, w2, b2)

    return y[:n] if n_pad != n else y


def feed_forward(x, params, *, tm=256):
    """FeedForward forward pass.

    x: (..., dim), real floating or complex64.
    params: dict with w1 (dim, hidden), b1 (hidden,), w2 (hidden, dim), b2 (dim,).
    tm: row tile (rows per grid step). 256 fills the v6e/v7x 256x256 MXU;
        128 is the v5e sweet spot.
    """
    w1 = params["w1"]
    b1 = params["b1"].reshape(1, -1)
    w2 = params["w2"]
    b2 = params["b2"].reshape(1, -1)
    dim = w1.shape[0]

    orig_shape = x.shape
    run = functools.partial(_ffn_2d, w1=w1, b1=b1, w2=w2, b2=b2, tm=tm)

    if jnp.iscomplexobj(x):
        # ComplexFn: apply the real-valued net to real and imag parts.
        # Stack them into one (2N, dim) array -> single pallas_call, weights
        # DMA'd once, longer grid for megacore sharding.
        xr = jnp.real(x).reshape(-1, dim)
        xi = jnp.imag(x).reshape(-1, dim)
        n = xr.shape[0]
        y = run(jnp.concatenate([xr, xi], axis=0))
        yr, yi = y[:n], y[n:]
        y = lax.complex(yr, yi).reshape(orig_shape)
    else:
        y = run(x.reshape(-1, dim)).reshape(orig_shape)
    return y


def init_params(key, dim, hidden_dim, dtype=jnp.float32):
    """Deterministic synthetic init (nn.Linear-like uniform fan-in scaling)."""
    k1, k2, k3, k4 = jax.random.split(key, 4)
    lim1 = 1.0 / (dim ** 0.5)
    lim2 = 1.0 / (hidden_dim ** 0.5)
    return {
        "w1": jax.random.uniform(k1, (dim, hidden_dim), dtype, -lim1, lim1),
        "b1": jax.random.uniform(k2, (hidden_dim,), dtype, -lim1, lim1),
        "w2": jax.random.uniform(k3, (hidden_dim, dim), dtype, -lim2, lim2),
        "b2": jax.random.uniform(k4, (dim,), dtype, -lim2, lim2),
    }


def _reference(x, params):
    """Plain-JAX reference for correctness check."""
    w1, b1, w2, b2 = params["w1"], params["b1"], params["w2"], params["b2"]

    def net(u):
        h = u @ w1 + b1
        h = jax.nn.gelu(h, approximate=False)
        return h @ w2 + b2

    if jnp.iscomplexobj(x):
        return lax.complex(net(jnp.real(x)), net(jnp.imag(x)))
    return net(x)


if __name__ == "__main__":
    batch, seq, dim, hidden = 2, 8, 32, 64
    key = jax.random.PRNGKey(0)
    kx, kp, ki = jax.random.split(key, 3)

    params = init_params(kp, dim, hidden)

    # Real path
    x = jax.random.normal(kx, (batch, seq, dim), dtype=jnp.float32)
    y = jax.block_until_ready(feed_forward(x, params))
    y_ref = _reference(x, params)
    assert y.shape == x.shape
    assert jnp.allclose(y, y_ref, atol=1e-5, rtol=1e-5)

    # Complex path (ComplexFn branch)
    xc = lax.complex(x, jax.random.normal(ki, x.shape, dtype=jnp.float32))
    yc = jax.block_until_ready(feed_forward(xc, params))
    yc_ref = _reference(xc, params)
    assert yc.dtype == jnp.complex64
    assert jnp.allclose(yc, yc_ref, atol=1e-5, rtol=1e-5)

    # Exercise the padding path (row count not a multiple of the tile) with a
    # larger row count so tm tiling and the >=2-step megacore grid are hit.
    x3 = jax.random.normal(ki, (3, 101, dim), dtype=jnp.float32)
    y3 = jax.block_until_ready(feed_forward(x3, params))
    assert jnp.allclose(y3, _reference(x3, params), atol=1e-5, rtol=1e-5)

    print("KERNEL_OK")
</pallas_src>

<mosaic_0001>
module attributes {stable_mosaic.version = 11 : i64} {
  func.func @_ffn_kernel(%arg0: i32, %arg1: memref<8x32xf32, #tpu.memory_space<vmem>>, %arg2: memref<32x64xf32, #tpu.memory_space<vmem>>, %arg3: memref<1x64xf32, #tpu.memory_space<vmem>>, %arg4: memref<64x32xf32, #tpu.memory_space<vmem>>, %arg5: memref<1x32xf32, #tpu.memory_space<vmem>>, %arg6: memref<8x32xf32, #tpu.memory_space<vmem>>) attributes {dimension_semantics = [#tpu.dimension_semantics<parallel>], iteration_bounds = array<i64: 2>, scalar_prefetch = 0 : i64, scratch_operands = 0 : i64, tpu.core_type = #tpu.core_type<tc>, window_params = [{transform_indices = @transform_0, window_bounds = array<i64: 8, 32>}, {pipeline_mode = #tpu.pipeline_mode<synchronous>, transform_indices = @transform_1, window_bounds = array<i64: 32, 64>}, {pipeline_mode = #tpu.pipeline_mode<synchronous>, transform_indices = @transform_2, window_bounds = array<i64: 1, 64>}, {pipeline_mode = #tpu.pipeline_mode<synchronous>, transform_indices = @transform_3, window_bounds = array<i64: 64, 32>}, {pipeline_mode = #tpu.pipeline_mode<synchronous>, transform_indices = @transform_4, window_bounds = array<i64: 1, 32>}, {transform_indices = @transform_5, window_bounds = array<i64: 8, 32>}]} {
    %c0 = arith.constant 0 : index
    %c0_0 = arith.constant 0 : index
    %0 = vector.load %arg1[%c0, %c0_0] : memref<8x32xf32, #tpu.memory_space<vmem>>, vector<8x32xf32>
    %c0_1 = arith.constant 0 : index
    %c0_2 = arith.constant 0 : index
    %1 = vector.load %arg2[%c0_1, %c0_2] : memref<32x64xf32, #tpu.memory_space<vmem>>, vector<32x64xf32>
    %cst = arith.constant dense<0.000000e+00> : vector<8x64xf32>
    %2 = tpu.matmul %0, %1, %cst {dimension_numbers = #tpu.dot_dimension_numbers<[1], [0], [0], [1], [0, 0, 1, 1], [], []>} : vector<8x32xf32>, vector<32x64xf32>, vector<8x64xf32> -> vector<8x64xf32>
    %c0_3 = arith.constant 0 : index
    %c0_4 = arith.constant 0 : index
    %3 = vector.load %arg3[%c0_3, %c0_4] : memref<1x64xf32, #tpu.memory_space<vmem>>, vector<1x64xf32>
    %4 = vector.broadcast %3 : vector<1x64xf32> to vector<8x64xf32>
    %5 = arith.addf %2, %4 : vector<8x64xf32>
    %cst_5 = arith.constant 5.000000e-01 : f32
    %6 = vector.broadcast %cst_5 : f32 to vector<8x64xf32>
    %7 = arith.mulf %6, %5 : vector<8x64xf32>
    %cst_6 = arith.constant 0.707106769 : f32
    %8 = vector.broadcast %cst_6 : f32 to vector<8x64xf32>
    %9 = arith.mulf %5, %8 : vector<8x64xf32>
    %10 = math.erf %9 : vector<8x64xf32>
    %cst_7 = arith.constant 1.000000e+00 : f32
    %11 = vector.broadcast %cst_7 : f32 to vector<8x64xf32>
    %12 = arith.addf %11, %10 : vector<8x64xf32>
    %13 = arith.mulf %7, %12 : vector<8x64xf32>
    %c0_8 = arith.constant 0 : index
    %c0_9 = arith.constant 0 : index
    %14 = vector.load %arg4[%c0_8, %c0_9] : memref<64x32xf32, #tpu.memory_space<vmem>>, vector<64x32xf32>
    %cst_10 = arith.constant dense<0.000000e+00> : vector<8x32xf32>
    %15 = tpu.matmul %13, %14, %cst_10 {dimension_numbers = #tpu.dot_dimension_numbers<[1], [0], [0], [1], [0, 0, 1, 1], [], []>} : vector<8x64xf32>, vector<64x32xf32>, vector<8x32xf32> -> vector<8x32xf32>
    %c0_11 = arith.constant 0 : index
    %c0_12 = arith.constant 0 : index
    %16 = vector.load %arg5[%c0_11, %c0_12] : memref<1x32xf32, #tpu.memory_space<vmem>>, vector<1x32xf32>
    %17 = vector.broadcast %16 : vector<1x32xf32> to vector<8x32xf32>
    %18 = arith.addf %15, %17 : vector<8x32xf32>
    %c0_13 = arith.constant 0 : index
    %c0_14 = arith.constant 0 : index
    %19 = vector.load %arg6[%c0_13, %c0_14] : memref<8x32xf32, #tpu.memory_space<vmem>>, vector<8x32xf32>
    tpu.vector_store %arg6[%c0_13, %c0_14], %18 {strides = array<i32>} : memref<8x32xf32, #tpu.memory_space<vmem>>, vector<8x32xf32>,
    return
  }
  func.func @transform_0(%arg0: i32) -> (i32, i32) {
    %c0_i32 = arith.constant 0 : i32
    %c0_i32_0 = arith.constant 0 : i32
    return %arg0, %c0_i32 : i32, i32
  }
  func.func @transform_1(%arg0: i32) -> (i32, i32) {
    %c0_i32 = arith.constant 0 : i32
    %c0_i32_0 = arith.constant 0 : i32
    %c0_i32_1 = arith.constant 0 : i32
    return %c0_i32, %c0_i32_0 : i32, i32
  }
  func.func @transform_2(%arg0: i32) -> (i32, i32) {
    %c0_i32 = arith.constant 0 : i32
    %c0_i32_0 = arith.constant 0 : i32
    %c0_i32_1 = arith.constant 0 : i32
    return %c0_i32, %c0_i32_0 : i32, i32
  }
  func.func @transform_3(%arg0: i32) -> (i32, i32) {
    %c0_i32 = arith.constant 0 : i32
    %c0_i32_0 = arith.constant 0 : i32
    %c0_i32_1 = arith.constant 0 : i32
    return %c0_i32, %c0_i32_0 : i32, i32
  }
  func.func @transform_4(%arg0: i32) -> (i32, i32) {
    %c0_i32 = arith.constant 0 : i32
    %c0_i32_0 = arith.constant 0 : i32
    %c0_i32_1 = arith.constant 0 : i32
    return %c0_i32, %c0_i32_0 : i32, i32
  }
  func.func @transform_5(%arg0: i32) -> (i32, i32) {
    %c0_i32 = arith.constant 0 : i32
    %c0_i32_0 = arith.constant 0 : i32
    return %arg0, %c0_i32 : i32, i32
  }
}

module attributes {stable_mosaic.version = 11 : i64} {
  func.func @_ffn_kernel(%arg0: i32, %arg1: memref<8x32xf32, #tpu.memory_space<vmem>>, %arg2: memref<32x64xf32, #tpu.memory_space<vmem>>, %arg3: memref<1x64xf32, #tpu.memory_space<vmem>>, %arg4: memref<64x32xf32, #tpu.memory_space<vmem>>, %arg5: memref<1x32xf32, #tpu.memory_space<vmem>>, %arg6: memref<8x32xf32, #tpu.memory_space<vmem>>) attributes {dimension_semantics = [#tpu.dimension_semantics<parallel>], iteration_bounds = array<i64: 2>, scalar_prefetch = 0 : i64, scratch_operands = 0 : i64, tpu.core_type = #tpu.core_type<tc>, window_params = [{transform_indices = @transform_0, window_bounds = array<i64: 8, 32>}, {pipeline_mode = #tpu.pipeline_mode<synchronous>, transform_indices = @transform_1, window_bounds = array<i64: 32, 64>}, {pipeline_mode = #tpu.pipeline_mode<synchronous>, transform_indices = @transform_2, window_bounds = array<i64: 1, 64>}, {pipeline_mode = #tpu.pipeline_mode<synchronous>, transform_indices = @transform_3, window_bounds = array<i64: 64, 32>}, {pipeline_mode = #tpu.pipeline_mode<synchronous>, transform_indices = @transform_4, window_bounds = array<i64: 1, 32>}, {transform_indices = @transform_5, window_bounds = array<i64: 8, 32>}]} {
    %c0 = arith.constant 0 : index
    %c0_0 = arith.constant 0 : index
    %0 = vector.load %arg1[%c0, %c0_0] : memref<8x32xf32, #tpu.memory_space<vmem>>, vector<8x32xf32>
    %c0_1 = arith.constant 0 : index
    %c0_2 = arith.constant 0 : index
    %1 = vector.load %arg2[%c0_1, %c0_2] : memref<32x64xf32, #tpu.memory_space<vmem>>, vector<32x64xf32>
    %cst = arith.constant dense<0.000000e+00> : vector<8x64xf32>
    %2 = tpu.matmul %0, %1, %cst {dimension_numbers = #tpu.dot_dimension_numbers<[1], [0], [0], [1], [0, 0, 1, 1], [], []>} : vector<8x32xf32>, vector<32x64xf32>, vector<8x64xf32> -> vector<8x64xf32>
    %c0_3 = arith.constant 0 : index
    %c0_4 = arith.constant 0 : index
    %3 = vector.load %arg3[%c0_3, %c0_4] : memref<1x64xf32, #tpu.memory_space<vmem>>, vector<1x64xf32>
    %4 = vector.broadcast %3 : vector<1x64xf32> to vector<8x64xf32>
    %5 = arith.addf %2, %4 : vector<8x64xf32>
    %cst_5 = arith.constant 5.000000e-01 : f32
    %6 = vector.broadcast %cst_5 : f32 to vector<8x64xf32>
    %7 = arith.mulf %6, %5 : vector<8x64xf32>
    %cst_6 = arith.constant 0.707106769 : f32
    %8 = vector.broadcast %cst_6 : f32 to vector<8x64xf32>
    %9 = arith.mulf %5, %8 : vector<8x64xf32>
    %10 = math.erf %9 : vector<8x64xf32>
    %cst_7 = arith.constant 1.000000e+00 : f32
    %11 = vector.broadcast %cst_7 : f32 to vector<8x64xf32>
    %12 = arith.addf %11, %10 : vector<8x64xf32>
    %13 = arith.mulf %7, %12 : vector<8x64xf32>
    %c0_8 = arith.constant 0 : index
    %c0_9 = arith.constant 0 : index
    %14 = vector.load %arg4[%c0_8, %c0_9] : memref<64x32xf32, #tpu.memory_space<vmem>>, vector<64x32xf32>
    %cst_10 = arith.constant dense<0.000000e+00> : vector<8x32xf32>
    %15 = tpu.matmul %13, %14, %cst_10 {dimension_numbers = #tpu.dot_dimension_numbers<[1], [0], [0], [1], [0, 0, 1, 1], [], []>} : vector<8x64xf32>, vector<64x32xf32>, vector<8x32xf32> -> vector<8x32xf32>
    %c0_11 = arith.constant 0 : index
    %c0_12 = arith.constant 0 : index
    %16 = vector.load %arg5[%c0_11, %c0_12] : memref<1x32xf32, #tpu.memory_space<vmem>>, vector<1x32xf32>
    %17 = vector.broadcast %16 : vector<1x32xf32> to vector<8x32xf32>
    %18 = arith.addf %15, %17 : vector<8x32xf32>
    %c0_13 = arith.constant 0 : index
    %c0_14 = arith.constant 0 : index
    %19 = vector.load %arg6[%c0_13, %c0_14] : memref<8x32xf32, #tpu.memory_space<vmem>>, vector<8x32xf32>
    tpu.vector_store %arg6[%c0_13, %c0_14], %18 {strides = array<i32>} : memref<8x32xf32, #tpu.memory_space<vmem>>, vector<8x32xf32>,
    return
  }
  func.func @transform_0(%arg0: i32) -> (i32, i32) {
    %c0_i32 = arith.constant 0 : i32
    %c0_i32_0 = arith.constant 0 : i32
    return %arg0, %c0_i32 : i32, i32
  }
  func.func @transform_1(%arg0: i32) -> (i32, i32) {
    %c0_i32 = arith.constant 0 : i32
    %c0_i32_0 = arith.constant 0 : i32
    %c0_i32_1 = arith.constant 0 : i32
    return %c0_i32, %c0_i32_0 : i32, i32
  }
  func.func @transform_2(%arg0: i32) -> (i32, i32) {
    %c0_i32 = arith.constant 0 : i32
    %c0_i32_0 = arith.constant 0 : i32
    %c0_i32_1 = arith.constant 0 : i32
    return %c0_i32, %c0_i32_0 : i32, i32
  }
  func.func @transform_3(%arg0: i32) -> (i32, i32) {
    %c0_i32 = arith.constant 0 : i32
    %c0_i32_0 = arith.constant 0 : i32
    %c0_i32_1 = arith.constant 0 : i32
    return %c0_i32, %c0_i32_0 : i32, i32
  }
  func.func @transform_4(%arg0: i32) -> (i32, i32) {
    %c0_i32 = arith.constant 0 : i32
    %c0_i32_0 = arith.constant 0 : i32
    %c0_i32_1 = arith.constant 0 : i32
    return %c0_i32, %c0_i32_0 : i32, i32
  }
  func.func @transform_5(%arg0: i32) -> (i32, i32) {
    %c0_i32 = arith.constant 0 : i32
    %c0_i32_0 = arith.constant 0 : i32
    return %arg0, %c0_i32 : i32, i32
  }
}

</mosaic_0001>

<bundles_post_ra>
// kernel: tpu_custom_call.1
= control target key start
LH: loop header
LB: loop body
LE: loop exit
PB: predicated region body
PF: predicated region fallthrough
CT: control target
= control target key end

     0   :  { %10 = vsyncpa [#allocation3], 0  ;;  %s688_s0 = inlined_call_operand.vmem [shape: f32[16,32], index: 0, kind: input, shape index: {}]   ;;  %s689_s1 = inlined_call_operand.vmem [shape: f32[32,64], index: 1, kind: input, shape index: {}]   ;;  %s690_s2 = inlined_call_operand.vmem [shape: f32[1,64], index: 2, kind: input, shape index: {}]   ;;  %s691_s3 = inlined_call_operand.vmem [shape: f32[64,32], index: 3, kind: input, shape index: {}]   ;;  %s692_s4 = inlined_call_operand.vmem [shape: f32[1,32], index: 4, kind: input, shape index: {}]   ;;  %s693_s5 = inlined_call_operand.hbm [shape: f32[16,32], index: 5, kind: output, shape index: {}]  }
   0x1   :  { %12 = vsyncpa [#allocation3 + $0x1], 0  ;;  %s559_s18 = smov 0   ;;  %s561_s19 = smov 0  }
   0x2   :  { %s563_s20 = smov 0   ;;  %s565_s21 = smov 0  }
   0x3 LB: > { %s580_s22 = sadd.s32 4294967295, %s527_s21   ;;  %s409_s23 = sadd.s32 4294967294, %s527_s21   ;;  %s527_s21 = sphi %s565_s21, %s699_s21   ;;  %s523_s20 = sphi %s563_s20, %s698_s20   ;;  %s519_s19 = sphi %s561_s19, %s697_s19   ;;  %s515_s18 = sphi %s559_s18, %s696_s18  }
   0x4   : > { %s584_s24 = sadd.s32 1, %s527_s21   ;;  %s135_s25 = sadd.s32 1, %s523_s20 }
   0x5   : > { %s132_s26 = ssub.s32 %s527_s21, %s584_s24  ;;  %p145_p0 = scmp.ne.s32.totalorder %s523_s20, %s519_s19 }
   0x6   : > { %p133_p1 = scmp.eq.s32.totalorder %s132_s26, 0  ;;  %p146_p2 = scmp.eq.s32.totalorder %s580_s22, 1 }
   0x7   : > { %p151_p3 = scmp.ne.s32.totalorder %s519_s19, %s515_s18  ;;  %p152_p4 = scmp.eq.s32.totalorder %s409_s23, 1 }
   0x8   : > { %s595_s27 = scalar_select %p133_p1, %s523_s20, %s135_s25  }
   0x9   : > { %p597_p5 = por %p146_p2, %p145_p0  ;;  %p601_p6 = por %p152_p4, %p151_p3 }
   0xa   : > { %p412_p7 = scmp.ge.s32.totalorder %s527_s21, 1  ;;  %p189_p8 = scmp.lt.s32.totalorder %s527_s21, 3 }
   0xc   : > { %p190_p9 = pnand %p412_p7, %p189_p8 }
   0xd   : > { %p216_p10 = scmp.lt.s32.totalorder (!%p190_p9), %s580_s22, 1  ;;  %s213_s26 = sand.u32 (!%p190_p9), 1, %s519_s19  }
   0xe   : > { %193 = sbr.rel (%p190_p9) target bundleno = 337 (0x151), region = 40  ;;  %s413_s30 = sshll.u32 (!%p190_p9), %s213_s26, 3 }
   0xf   : > { %s419_s6 = sshll.u32 (!%p190_p9), %s580_s22, 3  ;;  %s215_s12 = scalar_lea.vmem (!%p190_p9), [#allocation2], %s413_s30 }
  0x10   : > { %s345_s9 = scalar_lea.hbm (!%p190_p9), %s693_s5, %s419_s6  ;;  %s347_s13 = sshll.u32 (!%p190_p9), %s215_s12, 4  ;;  %s348_s13 = int_to_ptr.vmem [resolvable:$true] %s347_s13 }
  0x11   : > { %s335_s15 = scalar_lea.sflag (!%p190_p9), [#allocation3], %s213_s26  ;;  %s485_s25 = scalar_lea.hbm (!%p190_p9), %s693_s5, 16 }
  0x13   : > { %v224_v0 = vld [vmem:[%s689_s1 + $0x18] sm:$0xff]  ;;  %v223_v1 = vld [vmem:[%s689_s1 + $0x10] sm:$0xff]  ;;  %v222_v2 = vld [vmem:[%s689_s1 + $0x8] sm:$0xff]  ;;  %s217_s11 = scalar_select %p216_p10, %s580_s22, 1  ;;  %vm229_vm0 = vcmask 261120   ;;  %vm309_vm5 = vcmask 523264  }
  0x14   : > { %245 = vmatpush.msra.mxu0 %v224_v0  ;;  %v221_v3 = vld [vmem:[%s689_s1] sm:$0xff]  ;;  %v304_v11 = vld [vmem:[%s691_s3 + $0x38] sm:$0xff]  ;;  %v303_v14 = vld [vmem:[%s691_s3 + $0x30] sm:$0xff] }
  0x15   : > { %s414_s14 = sshll.u32 %s217_s11, 3  ;;  %v461_v5 = vld [vmem:[%s690_s2] ss:$0 sm:$0xff]  ;;  %321 = vmatpush.msra.mxu1 %v304_v11  ;;  %v302_v17 = vld [vmem:[%s691_s3 + $0x28] sm:$0xff]  ;;  %v300_v21 = vld [vmem:[%s691_s3 + $0x18] sm:$0xff] }
  0x16   : > { %246 = vmatpush.msra.mxu0 %v223_v1  ;;  %s219_s17 = scalar_lea.vmem %s688_s0, %s414_s14  ;;  %v301_v20 = vld [vmem:[%s691_s3 + $0x20] sm:$0xff]  ;;  %v299_v23 = vld [vmem:[%s691_s3 + $0x10] sm:$0xff]  ;;  %v298_v26 = vld [vmem:[%s691_s3 + $0x8] sm:$0xff]  ;;  %s349_s14 = sshll.u32 %s345_s9, 4  ;;  %s350_s14 = int_to_ptr.hbm [resolvable:$true] %s349_s14 }
  0x17   : > { %v220_v4 = vld [vmem:[%s219_s17] sm:$0xff]  ;;  %322 = vmatpush.msra.mxu1 %v303_v14  ;;  %s479_s22 = sshra.s32 %s350_s14, 4  ;;  %s480_s22 = int_to_ptr.hbm [resolvable:$true] %s479_s22 }
  0x18   : > { %247 = vmatpush.msra.mxu0 %v222_v2  ;;  %v297_v28 = vld [vmem:[%s691_s3] sm:$0xff]  ;;  %s481_s16 = scalar_lea.hbm %s480_s22, 8  ;;  %p486_p0 = scmp.lt.s32.totalorder %s480_s22, %s693_s5 }
  0x19   : > { %323 = vmatpush.msra.mxu1 %v302_v17  ;;  %v462_v55 = vld [vmem:[%s692_s4] ss:$0 sm:$0xff]  ;;  %p482_p11 = scmp.ne.s32.totalorder %s480_s22, %s481_s16  ;;  %p487_p1 = scmp.lt.s32.totalorder %s485_s25, %s481_s16 }
  0x1a   : > { %248 = vmatpush.msra.mxu0 %v221_v3 }
  0x1b   : > { %415 = vmatmul.msk.f32.vlgmr.msra.gmra.mxu0 %vm229_vm0, %v220_v4  ;;  %324 = vmatpush.msra.mxu1 %v301_v20  ;;  %p483_p12 = pnand %p482_p11, %p597_p5  ;;  %p488_p2 = por %p487_p1, %p486_p0 }
  0x1d   : > { %325 = vmatpush.msra.mxu1 %v300_v21  ;;  %p484_p13 = pneg %p483_p12 }
  0x1f   : > { %326 = vmatpush.msra.mxu1 %v299_v23  ;;  %p489_p3 = pnand %p488_p2, %p484_p13 }
  0x21   : > { %327 = vmatpush.msra.mxu1 %v298_v26 }
  0x23   : > { %328 = vmatpush.msra.mxu1 %v297_v28 }
  0x98   : > { %v250_v6 = vpop.f32.mrf.mxu0 }
  0x99   : > { %v251_v7 = vadd.f32 %v461_v5, %v250_v6 }
  0x9b   : > { %v254_v8 = vmul.f32 0.70710677, %v251_v7  ;;  %v253_v52 = vmul.f32 0.5, %v251_v7 }
  0x9d   : > { %v255_v9 = vmul.f32 %v254_v8, %v254_v8 }
  0x9f   : > { %v256_v10 = vmin.f32 %v255_v9, 16.0 }
  0xa1   : > { %v257_v12 = vmul.f32 2.1237322e-06, %v256_v10  ;;  %v268_v13 = vmul.f32 3.8918573e-05, %v256_v10 }
  0xa3   : > { %v258_v15 = vadd.f32 0.00028619796, %v257_v12  ;;  %v269_v16 = vadd.f32 0.001143296, %v268_v13 }
  0xa5   : > { %v259_v18 = vmul.f32 %v258_v15, %v256_v10  ;;  %v270_v19 = vmul.f32 %v269_v16, %v256_v10 }
  0xa7   : > { %v271_v22 = vadd.f32 0.014752088, %v270_v19  ;;  %v260_v24 = vadd.f32 0.0036580483, %v259_v18 }
  0xa9   : > { %v272_v25 = vmul.f32 %v271_v22, %v256_v10  ;;  %v261_v29 = vmul.f32 %v260_v24, %v256_v10 }
  0xab   : > { %v273_v27 = vadd.f32 0.112945676, %v272_v25  ;;  %v262_v32 = vadd.f32 0.05243302, %v261_v29 }
  0xad   : > { %v274_v30 = vmul.f32 %v273_v27, %v256_v10  ;;  %v263_v35 = vmul.f32 %v262_v32, %v256_v10 }
  0xaf   : > { %v275_v31 = vadd.f32 0.4994258, %v274_v30  ;;  %v264_v36 = vadd.f32 0.18741608, %v263_v35 }
  0xb1   : > { %v276_v33 = vmul.f32 %v275_v31, %v256_v10  ;;  %v265_v38 = vmul.f32 %v264_v36, %v256_v10 }
  0xb3   : > { %v277_v34 = vadd.f32 1.0, %v276_v33  ;;  %v266_v42 = vadd.f32 1.1283791, %v265_v38 }
  0xb5   : > { %463 = vrcp.f32 %v277_v34  ;;  %v289_v41 = vand.u32 2147483648, %v277_v34  ;;  %v287_v44 = vand.u32 2147483647, %v277_v34  ;;  %vm283_vm2 = vweird.f32 %v277_v34 }
  0xb6   : > { %v267_v47 = vmul.f32 %v266_v42, %v254_v8 }
  0xb7   : > { %v290_v46 = vor.u32 1.1754944e-38, %v289_v41  ;;  %vm288_vm4 = vcmp.eq.f32.partialorder %v287_v44, 8.507059e+37 }
  0xbb   : > { %v464_v37 = vpop.eup %463 }
  0xbc   : > { %v279_v39 = vmul.f32 %v464_v37, %v277_v34  ;;  %vm284_vm1 = vweird.f32 %v464_v37 }
  0xbd   : > { %vm285_vm3 = vmor %vm283_vm2, %vm284_vm1 }
  0xbe   : > { %v280_v40 = vsub.f32 1.0, %v279_v39 }
  0xc0   : > { %v281_v43 = vmul.f32 %v464_v37, %v280_v40 }
  0xc2   : > { %v282_v45 = vadd.f32 %v464_v37, %v281_v43 }
  0xc4   : > { %v286_v48 = vsel %vm285_vm3, %v464_v37, %v282_v45 }
  0xc5   : > { %v291_v49 = vsel %vm288_vm4, %v290_v46, %v286_v48 }
  0xc6   : > { %v292_v50 = vmul.f32 %v291_v49, %v267_v47 }
  0xc8   : > { %v416_v51 = vclamps-f32 %v292_v50, 1.0 }
  0xca   : > { %v295_v53 = vadd.f32 1.0, %v416_v51 }
  0xcc   : > { %v296_v54 = vmul.f32 %v295_v53, %v253_v52 }
  0xce   : > { %417 = vmatmul.msk.f32.vlgmr.msra.gmra.mxu1 %vm309_vm5, %v296_v54 }
 0x14b   : > { %v330_v56 = vpop.f32.mrf.mxu1 }
 0x14c   : > { %v331_v57 = vadd.f32 %v462_v55, %v330_v56 }
 0x14e   : > { %333 = vst.msk [vmem:[%s215_s12] sm:$0xff] %vm229_vm0, %v331_v57 }
 0x14f   : > { %492 = shalt.err (!%p489_p3)
}
 0x150   : > { %422 = dma.vmem_to_hbm [thread:$0]  (%p597_p5), %s348_s13, 128, %s350_s14, %s335_s15  }
 0x151 PF: > { %p428_p4 = scmp.ge.s32.totalorder %s527_s21, 2  ;;  %s361_s26 = sand.u32 1, %s515_s18  }
 0x152   : > { %s362_s7 = scalar_lea.sflag [#allocation3], %s361_s26 }
 0x153   : > { %p425_p7 = pnand %p428_p4, %p601_p6 }
 0x155   : > { %p426_p8 = pneg %p425_p7 }
 0x157   : > { %510 = dma.done.wait (%p426_p8), %s362_s7, 128  }
 0x158   : > { %512 = vsyncadd (%p426_p8), %s362_s7, 4294967168  ;;  %p15_p9 = scmp.ge.s32.totalorder %s584_s24, 4   ;;  %s696_s18 = smov %s519_s19 }
 0x159   : > { %s697_s19 = smov %s523_s20  ;;  %s698_s20 = smov %s595_s27 }
 0x15a   : > { %s699_s21 = smov %s584_s24  ;;  %17 = sbr.rel (!%p15_p9) target bundleno = 3 (0x3), region = 75 }
 0x15f   :  { %368 = vsyncpa [#allocation3], 1 }
 0x160   :  { %370 = vsyncpa [#allocation3 + $0x1], 1 }

// kernel: tpu_custom_call.1
= control target key start
LH: loop header
LB: loop body
LE: loop exit
PB: predicated region body
PF: predicated region fallthrough
CT: control target
= control target key end

     0   :  { %10 = vsyncpa [#allocation3], 0  ;;  %s688_s0 = inlined_call_operand.vmem [shape: f32[16,32], index: 0, kind: input, shape index: {}]   ;;  %s689_s1 = inlined_call_operand.vmem [shape: f32[32,64], index: 1, kind: input, shape index: {}]   ;;  %s690_s2 = inlined_call_operand.vmem [shape: f32[1,64], index: 2, kind: input, shape index: {}]   ;;  %s691_s3 = inlined_call_operand.vmem [shape: f32[64,32], index: 3, kind: input, shape index: {}]   ;;  %s692_s4 = inlined_call_operand.vmem [shape: f32[1,32], index: 4, kind: input, shape index: {}]   ;;  %s693_s5 = inlined_call_operand.hbm [shape: f32[16,32], index: 5, kind: output, shape index: {}]  }
   0x1   :  { %12 = vsyncpa [#allocation3 + $0x1], 0  ;;  %s559_s18 = smov 0   ;;  %s561_s19 = smov 0  }
   0x2   :  { %s563_s20 = smov 0   ;;  %s565_s21 = smov 0  }
   0x3 LB: > { %s580_s22 = sadd.s32 4294967295, %s527_s21   ;;  %s409_s23 = sadd.s32 4294967294, %s527_s21   ;;  %s527_s21 = sphi %s565_s21, %s699_s21   ;;  %s523_s20 = sphi %s563_s20, %s698_s20   ;;  %s519_s19 = sphi %s561_s19, %s697_s19   ;;  %s515_s18 = sphi %s559_s18, %s696_s18  }
   0x4   : > { %s584_s24 = sadd.s32 1, %s527_s21   ;;  %s135_s25 = sadd.s32 1, %s523_s20 }
   0x5   : > { %s132_s26 = ssub.s32 %s527_s21, %s584_s24  ;;  %p145_p0 = scmp.ne.s32.totalorder %s523_s20, %s519_s19 }
   0x6   : > { %p133_p1 = scmp.eq.s32.totalorder %s132_s26, 0  ;;  %p146_p2 = scmp.eq.s32.totalorder %s580_s22, 1 }
   0x7   : > { %p151_p3 = scmp.ne.s32.totalorder %s519_s19, %s515_s18  ;;  %p152_p4 = scmp.eq.s32.totalorder %s409_s23, 1 }
   0x8   : > { %s595_s27 = scalar_select %p133_p1, %s523_s20, %s135_s25  }
   0x9   : > { %p597_p5 = por %p146_p2, %p145_p0  ;;  %p601_p6 = por %p152_p4, %p151_p3 }
   0xa   : > { %p412_p7 = scmp.ge.s32.totalorder %s527_s21, 1  ;;  %p189_p8 = scmp.lt.s32.totalorder %s527_s21, 3 }
   0xc   : > { %p190_p9 = pnand %p412_p7, %p189_p8 }
   0xd   : > { %p216_p10 = scmp.lt.s32.totalorder (!%p190_p9), %s580_s22, 1  ;;  %s213_s26 = sand.u32 (!%p190_p9), 1, %s519_s19  }
   0xe   : > { %193 = sbr.rel (%p190_p9) target bundleno = 337 (0x151), region = 40  ;;  %s413_s30 = sshll.u32 (!%p190_p9), %s213_s26, 3 }
   0xf   : > { %s419_s6 = sshll.u32 (!%p190_p9), %s580_s22, 3  ;;  %s215_s12 = scalar_lea.vmem (!%p190_p9), [#allocation2], %s413_s30 }
  0x10   : > { %s345_s9 = scalar_lea.hbm (!%p190_p9), %s693_s5, %s419_s6  ;;  %s347_s13 = sshll.u32 (!%p190_p9), %s215_s12, 4  ;;  %s348_s13 = int_to_ptr.vmem [resolvable:$true] %s347_s13 }
  0x11   : > { %s335_s15 = scalar_lea.sflag (!%p190_p9), [#allocation3], %s213_s26  ;;  %s485_s25 = scalar_lea.hbm (!%p190_p9), %s693_s5, 16 }
  0x13   : > { %v224_v0 = vld [vmem:[%s689_s1 + $0x18] sm:$0xff]  ;;  %v223_v1 = vld [vmem:[%s689_s1 + $0x10] sm:$0xff]  ;;  %v222_v2 = vld [vmem:[%s689_s1 + $0x8] sm:$0xff]  ;;  %s217_s11 = scalar_select %p216_p10, %s580_s22, 1  ;;  %vm229_vm0 = vcmask 261120   ;;  %vm309_vm5 = vcmask 523264  }
  0x14   : > { %245 = vmatpush.msra.mxu0 %v224_v0  ;;  %v221_v3 = vld [vmem:[%s689_s1] sm:$0xff]  ;;  %v304_v11 = vld [vmem:[%s691_s3 + $0x38] sm:$0xff]  ;;  %v303_v14 = vld [vmem:[%s691_s3 + $0x30] sm:$0xff] }
  0x15   : > { %s414_s14 = sshll.u32 %s217_s11, 3  ;;  %v461_v5 = vld [vmem:[%s690_s2] ss:$0 sm:$0xff]  ;;  %321 = vmatpush.msra.mxu1 %v304_v11  ;;  %v302_v17 = vld [vmem:[%s691_s3 + $0x28] sm:$0xff]  ;;  %v300_v21 = vld [vmem:[%s691_s3 + $0x18] sm:$0xff] }
  0x16   : > { %246 = vmatpush.msra.mxu0 %v223_v1  ;;  %s219_s17 = scalar_lea.vmem %s688_s0, %s414_s14  ;;  %v301_v20 = vld [vmem:[%s691_s3 + $0x20] sm:$0xff]  ;;  %v299_v23 = vld [vmem:[%s691_s3 + $0x10] sm:$0xff]  ;;  %v298_v26 = vld [vmem:[%s691_s3 + $0x8] sm:$0xff]  ;;  %s349_s14 = sshll.u32 %s345_s9, 4  ;;  %s350_s14 = int_to_ptr.hbm [resolvable:$true] %s349_s14 }
  0x17   : > { %v220_v4 = vld [vmem:[%s219_s17] sm:$0xff]  ;;  %322 = vmatpush.msra.mxu1 %v303_v14  ;;  %s479_s22 = sshra.s32 %s350_s14, 4  ;;  %s480_s22 = int_to_ptr.hbm [resolvable:$true] %s479_s22 }
  0x18   : > { %247 = vmatpush.msra.mxu0 %v222_v2  ;;  %v297_v28 = vld [vmem:[%s691_s3] sm:$0xff]  ;;  %s481_s16 = scalar_lea.hbm %s480_s22, 8  ;;  %p486_p0 = scmp.lt.s32.totalorder %s480_s22, %s693_s5 }
  0x19   : > { %323 = vmatpush.msra.mxu1 %v302_v17  ;;  %v462_v55 = vld [vmem:[%s692_s4] ss:$0 sm:$0xff]  ;;  %p482_p11 = scmp.ne.s32.totalorder %s480_s22, %s481_s16  ;;  %p487_p1 = scmp.lt.s32.totalorder %s485_s25, %s481_s16 }
  0x1a   : > { %248 = vmatpush.msra.mxu0 %v221_v3 }
  0x1b   : > { %415 = vmatmul.msk.f32.vlgmr.msra.gmra.mxu0 %vm229_vm0, %v220_v4  ;;  %324 = vmatpush.msra.mxu1 %v301_v20  ;;  %p483_p12 = pnand %p482_p11, %p597_p5  ;;  %p488_p2 = por %p487_p1, %p486_p0 }
  0x1d   : > { %325 = vmatpush.msra.mxu1 %v300_v21  ;;  %p484_p13 = pneg %p483_p12 }
  0x1f   : > { %326 = vmatpush.msra.mxu1 %v299_v23  ;;  %p489_p3 = pnand %p488_p2, %p484_p13 }
  0x21   : > { %327 = vmatpush.msra.mxu1 %v298_v26 }
  0x23   : > { %328 = vmatpush.msra.mxu1 %v297_v28 }
  0x98   : > { %v250_v6 = vpop.f32.mrf.mxu0 }
  0x99   : > { %v251_v7 = vadd.f32 %v461_v5, %v250_v6 }
  0x9b   : > { %v254_v8 = vmul.f32 0.70710677, %v251_v7  ;;  %v253_v52 = vmul.f32 0.5, %v251_v7 }
  0x9d   : > { %v255_v9 = vmul.f32 %v254_v8, %v254_v8 }
  0x9f   : > { %v256_v10 = vmin.f32 %v255_v9, 16.0 }
  0xa1   : > { %v257_v12 = vmul.f32 2.1237322e-06, %v256_v10  ;;  %v268_v13 = vmul.f32 3.8918573e-05, %v256_v10 }
  0xa3   : > { %v258_v15 = vadd.f32 0.00028619796, %v257_v12  ;;  %v269_v16 = vadd.f32 0.001143296, %v268_v13 }
  0xa5   : > { %v259_v18 = vmul.f32 %v258_v15, %v256_v10  ;;  %v270_v19 = vmul.f32 %v269_v16, %v256_v10 }
  0xa7   : > { %v271_v22 = vadd.f32 0.014752088, %v270_v19  ;;  %v260_v24 = vadd.f32 0.0036580483, %v259_v18 }
  0xa9   : > { %v272_v25 = vmul.f32 %v271_v22, %v256_v10  ;;  %v261_v29 = vmul.f32 %v260_v24, %v256_v10 }
  0xab   : > { %v273_v27 = vadd.f32 0.112945676, %v272_v25  ;;  %v262_v32 = vadd.f32 0.05243302, %v261_v29 }
  0xad   : > { %v274_v30 = vmul.f32 %v273_v27, %v256_v10  ;;  %v263_v35 = vmul.f32 %v262_v32, %v256_v10 }
  0xaf   : > { %v275_v31 = vadd.f32 0.4994258, %v274_v30  ;;  %v264_v36 = vadd.f32 0.18741608, %v263_v35 }
  0xb1   : > { %v276_v33 = vmul.f32 %v275_v31, %v256_v10  ;;  %v265_v38 = vmul.f32 %v264_v36, %v256_v10 }
  0xb3   : > { %v277_v34 = vadd.f32 1.0, %v276_v33  ;;  %v266_v42 = vadd.f32 1.1283791, %v265_v38 }
  0xb5   : > { %463 = vrcp.f32 %v277_v34  ;;  %v289_v41 = vand.u32 2147483648, %v277_v34  ;;  %v287_v44 = vand.u32 2147483647, %v277_v34  ;;  %vm283_vm2 = vweird.f32 %v277_v34 }
  0xb6   : > { %v267_v47 = vmul.f32 %v266_v42, %v254_v8 }
  0xb7   : > { %v290_v46 = vor.u32 1.1754944e-38, %v289_v41  ;;  %vm288_vm4 = vcmp.eq.f32.partialorder %v287_v44, 8.507059e+37 }
  0xbb   : > { %v464_v37 = vpop.eup %463 }
  0xbc   : > { %v279_v39 = vmul.f32 %v464_v37, %v277_v34  ;;  %vm284_vm1 = vweird.f32 %v464_v37 }
  0xbd   : > { %vm285_vm3 = vmor %vm283_vm2, %vm284_vm1 }
  0xbe   : > { %v280_v40 = vsub.f32 1.0, %v279_v39 }
  0xc0   : > { %v281_v43 = vmul.f32 %v464_v37, %v280_v40 }
  0xc2   : > { %v282_v45 = vadd.f32 %v464_v37, %v281_v43 }
  0xc4   : > { %v286_v48 = vsel %vm285_vm3, %v464_v37, %v282_v45 }
  0xc5   : > { %v291_v49 = vsel %vm288_vm4, %v290_v46, %v286_v48 }
  0xc6   : > { %v292_v50 = vmul.f32 %v291_v49, %v267_v47 }
  0xc8   : > { %v416_v51 = vclamps-f32 %v292_v50, 1.0 }
  0xca   : > { %v295_v53 = vadd.f32 1.0, %v416_v51 }
  0xcc   : > { %v296_v54 = vmul.f32 %v295_v53, %v253_v52 }
  0xce   : > { %417 = vmatmul.msk.f32.vlgmr.msra.gmra.mxu1 %vm309_vm5, %v296_v54 }
 0x14b   : > { %v330_v56 = vpop.f32.mrf.mxu1 }
 0x14c   : > { %v331_v57 = vadd.f32 %v462_v55, %v330_v56 }
 0x14e   : > { %333 = vst.msk [vmem:[%s215_s12] sm:$0xff] %vm229_vm0, %v331_v57 }
 0x14f   : > { %492 = shalt.err (!%p489_p3)
}
 0x150   : > { %422 = dma.vmem_to_hbm [thread:$0]  (%p597_p5), %s348_s13, 128, %s350_s14, %s335_s15  }
 0x151 PF: > { %p428_p4 = scmp.ge.s32.totalorder %s527_s21, 2  ;;  %s361_s26 = sand.u32 1, %s515_s18  }
 0x152   : > { %s362_s7 = scalar_lea.sflag [#allocation3], %s361_s26 }
 0x153   : > { %p425_p7 = pnand %p428_p4, %p601_p6 }
 0x155   : > { %p426_p8 = pneg %p425_p7 }
 0x157   : > { %510 = dma.done.wait (%p426_p8), %s362_s7, 128  }
 0x158   : > { %512 = vsyncadd (%p426_p8), %s362_s7, 4294967168  ;;  %p15_p9 = scmp.ge.s32.totalorder %s584_s24, 4   ;;  %s696_s18 = smov %s519_s19 }
 0x159   : > { %s697_s19 = smov %s523_s20  ;;  %s698_s20 = smov %s595_s27 }
 0x15a   : > { %s699_s21 = smov %s584_s24  ;;  %17 = sbr.rel (!%p15_p9) target bundleno = 3 (0x3), region = 75 }
 0x15f   :  { %368 = vsyncpa [#allocation3], 1 }
 0x160   :  { %370 = vsyncpa [#allocation3 + $0x1], 1 }

</bundles_post_ra>
